<compile_context>
chip_gen: v5e
topology: v5e:2x2
jax: 0.10.0
libtpu: 0.0.40
codegen_flags: <defaults>
</compile_context>

<pallas_src>
import jax
import jax.numpy as jnp
from jax.experimental import pallas as pl
from jax.experimental.pallas import tpu as pltpu

FEAT1, FEAT2, FEAT3 = 1024, 768, 1280   # mobilenet_v3_small / swin_t / effnet_v2_s widths
HIDDEN = 512
NUM_CLASS = 2
LANE = 128

_HI = jax.lax.Precision.HIGHEST  # keep wrapper-side folding / reference exact in f32


def _round_up(n, m):
    return ((n + m - 1) // m) * m


# ---------------------------------------------------------------------------
# Kernel: fused head   z = pooled @ W_fused + b_fused ; leaky_relu ; y = z @ W2p + b2p
# ---------------------------------------------------------------------------
def trident_head_kernel(pooled_ref, wf_ref, bf_ref, w2_ref, b2_ref, y_ref):
    pooled = pooled_ref[...]                                           # [B, C]
    z = jnp.dot(pooled, wf_ref[...],
                preferred_element_type=jnp.float32) + bf_ref[...]      # [B, 512]
    z = jnp.where(z > 0, z, 0.01 * z)                                  # leaky_relu (slope 0.01)
    y = jnp.dot(z, w2_ref[...],
                preferred_element_type=jnp.float32) + b2_ref[...]      # [B, 128] lane-dense
    y_ref[...] = y.astype(y_ref.dtype)


# ---------------------------------------------------------------------------
# Parameters (shapes follow the module's __init__; PyTorch Linear default init)
# ---------------------------------------------------------------------------
def init_params(key, in_channels, num_class=NUM_CLASS):
    ks = jax.random.split(key, 10)

    def lin(kw, kb, fan_in, fan_out):
        bound = 1.0 / jnp.sqrt(jnp.float32(fan_in))
        w = jax.random.uniform(kw, (fan_in, fan_out), jnp.float32, -bound, bound)
        b = jax.random.uniform(kb, (1, fan_out), jnp.float32, -bound, bound)
        return w, b

    wp1, bp1 = lin(ks[0], ks[1], in_channels, FEAT1)   # backbone-stub projections
    wp2, bp2 = lin(ks[2], ks[3], in_channels, FEAT2)
    wp3, bp3 = lin(ks[4], ks[5], in_channels, FEAT3)
    w1, b1 = lin(ks[6], ks[7], FEAT1 + FEAT2 + FEAT3, HIDDEN)   # fc1
    w2, b2 = lin(ks[8], ks[9], HIDDEN, num_class)               # fc2
    return dict(wp1=wp1, bp1=bp1, wp2=wp2, bp2=bp2, wp3=wp3, bp3=bp3,
                w1=w1, b1=b1, w2=w2, b2=b2)


def fuse_params(params, out_pad):
    """Fold the (linear) backbone stubs into fc1; pad fc2 to a lane-dense width."""
    w1 = params["w1"]
    w1a = w1[:FEAT1]
    w1b = w1[FEAT1:FEAT1 + FEAT2]
    w1c = w1[FEAT1 + FEAT2:]

    w_fused = (jnp.dot(params["wp1"], w1a, precision=_HI)
               + jnp.dot(params["wp2"], w1b, precision=_HI)
               + jnp.dot(params["wp3"], w1c, precision=_HI))           # [C, 512]
    b_fused = (params["b1"]
               + jnp.dot(params["bp1"], w1a, precision=_HI)
               + jnp.dot(params["bp2"], w1b, precision=_HI)
               + jnp.dot(params["bp3"], w1c, precision=_HI))           # [1, 512]

    num_class = params["w2"].shape[-1]
    w2p = jnp.zeros((HIDDEN, out_pad), jnp.float32).at[:, :num_class].set(params["w2"])
    b2p = jnp.zeros((1, out_pad), jnp.float32).at[:, :num_class].set(params["b2"])
    return w_fused, b_fused, w2p, b2p


# ---------------------------------------------------------------------------
# Forward wrapper
# ---------------------------------------------------------------------------
@jax.jit
def trident_forward(x, params):
    """x: [B, C, H, W] float32 (NCHW, matching the PyTorch module)."""
    B, C, H, W = x.shape
    num_class = params["b2"].shape[-1]
    out_pad = _round_up(num_class, LANE)

    # Global average pool in XLA: kernel input is only pooled[B, C].
    pooled = jnp.mean(x.reshape(B, C, H * W), axis=-1)

    wf, bf, w2p, b2p = fuse_params(params, out_pad)

    def vmem_spec():
        # Untiled, grid-invariant, single-buffered resident operand.
        return pl.BlockSpec(memory_space=pltpu.MemorySpace.VMEM)

    flops = 2 * B * (C * HIDDEN + HIDDEN * out_pad)
    bytes_accessed = 4 * (B * C + C * HIDDEN + HIDDEN
                          + HIDDEN * out_pad + out_pad + B * out_pad)

    y_pad = pl.pallas_call(
        trident_head_kernel,
        out_shape=jax.ShapeDtypeStruct((B, out_pad), jnp.float32),
        in_specs=[vmem_spec() for _ in range(5)],
        out_specs=vmem_spec(),
        cost_estimate=pl.CostEstimate(flops=flops, transcendentals=0,
                                      bytes_accessed=bytes_accessed),
    )(pooled, wf, bf, w2p, b2p)

    return y_pad[:, :num_class]


# ---------------------------------------------------------------------------
# Pure-JAX reference (unfused path, f32-exact matmuls) for correctness check
# ---------------------------------------------------------------------------
def trident_reference(x, params):
    B, C, H, W = x.shape
    pooled = jnp.mean(x.reshape(B, C, H * W), axis=-1)
    h1 = jnp.dot(pooled, params["wp1"], precision=_HI) + params["bp1"]
    h2 = jnp.dot(pooled, params["wp2"], precision=_HI) + params["bp2"]
    h3 = jnp.dot(pooled, params["wp3"], precision=_HI) + params["bp3"]
    h = jnp.concatenate([h1, h2, h3], axis=-1)
    z = jnp.dot(h, params["w1"], precision=_HI) + params["b1"]
    z = jnp.where(z > 0, z, 0.01 * z)
    return jnp.dot(z, params["w2"], precision=_HI) + params["b2"]


if __name__ == "__main__":
    key = jax.random.PRNGKey(0)
    k_x, k_p = jax.random.split(key)

    B, C, H, W = 2, 4, 16, 16
    x = jax.random.normal(k_x, (B, C, H, W), jnp.float32)
    params = init_params(k_p, in_channels=C, num_class=NUM_CLASS)

    y = jax.block_until_ready(trident_forward(x, params))
    y_ref = trident_reference(x, params)

    assert y.shape == (B, NUM_CLASS), y.shape
    assert jnp.allclose(y, y_ref, atol=1e-3, rtol=1e-3), "mismatch vs JAX reference"

    print("KERNEL_OK")
</pallas_src>

<mosaic_0001>
module attributes {stable_mosaic.version = 11 : i64} {
  func.func @trident_head_kernel(%arg0: memref<2x4xf32, #tpu.memory_space<vmem>>, %arg1: memref<4x512xf32, #tpu.memory_space<vmem>>, %arg2: memref<1x512xf32, #tpu.memory_space<vmem>>, %arg3: memref<512x128xf32, #tpu.memory_space<vmem>>, %arg4: memref<1x128xf32, #tpu.memory_space<vmem>>, %arg5: memref<2x128xf32, #tpu.memory_space<vmem>>) attributes {dimension_semantics = [], scalar_prefetch = 0 : i64, scratch_operands = 0 : i64, tpu.core_type = #tpu.core_type<tc>} {
    %c0 = arith.constant 0 : index
    %c0_0 = arith.constant 0 : index
    %0 = vector.load %arg0[%c0, %c0_0] : memref<2x4xf32, #tpu.memory_space<vmem>>, vector<2x4xf32>
    %c0_1 = arith.constant 0 : index
    %c0_2 = arith.constant 0 : index
    %1 = vector.load %arg1[%c0_1, %c0_2] : memref<4x512xf32, #tpu.memory_space<vmem>>, vector<4x512xf32>
    %cst = arith.constant dense<0.000000e+00> : vector<2x512xf32>
    %2 = tpu.matmul %0, %1, %cst {dimension_numbers = #tpu.dot_dimension_numbers<[1], [0], [0], [1], [0, 0, 1, 1], [], []>} : vector<2x4xf32>, vector<4x512xf32>, vector<2x512xf32> -> vector<2x512xf32>
    %c0_3 = arith.constant 0 : index
    %c0_4 = arith.constant 0 : index
    %3 = vector.load %arg2[%c0_3, %c0_4] : memref<1x512xf32, #tpu.memory_space<vmem>>, vector<1x512xf32>
    %4 = vector.broadcast %3 : vector<1x512xf32> to vector<2x512xf32>
    %5 = arith.addf %2, %4 : vector<2x512xf32>
    %cst_5 = arith.constant 0.000000e+00 : f32
    %6 = vector.broadcast %cst_5 : f32 to vector<2x512xf32>
    %7 = arith.cmpf ogt, %5, %6 : vector<2x512xf32>
    %cst_6 = arith.constant 0.00999999977 : f32
    %8 = vector.broadcast %cst_6 : f32 to vector<2x512xf32>
    %9 = arith.mulf %8, %5 : vector<2x512xf32>
    %10 = arith.select %7, %5, %9 : vector<2x512xi1>, vector<2x512xf32>
    %c0_7 = arith.constant 0 : index
    %c0_8 = arith.constant 0 : index
    %11 = vector.load %arg3[%c0_7, %c0_8] : memref<512x128xf32, #tpu.memory_space<vmem>>, vector<512x128xf32>
    %cst_9 = arith.constant dense<0.000000e+00> : vector<2x128xf32>
    %12 = tpu.matmul %10, %11, %cst_9 {dimension_numbers = #tpu.dot_dimension_numbers<[1], [0], [0], [1], [0, 0, 1, 1], [], []>} : vector<2x512xf32>, vector<512x128xf32>, vector<2x128xf32> -> vector<2x128xf32>
    %c0_10 = arith.constant 0 : index
    %c0_11 = arith.constant 0 : index
    %13 = vector.load %arg4[%c0_10, %c0_11] : memref<1x128xf32, #tpu.memory_space<vmem>>, vector<1x128xf32>
    %14 = vector.broadcast %13 : vector<1x128xf32> to vector<2x128xf32>
    %15 = arith.addf %12, %14 : vector<2x128xf32>
    %c0_12 = arith.constant 0 : index
    %c0_13 = arith.constant 0 : index
    %16 = vector.load %arg5[%c0_12, %c0_13] : memref<2x128xf32, #tpu.memory_space<vmem>>, vector<2x128xf32>
    tpu.vector_store %arg5[%c0_12, %c0_13], %15 {strides = array<i32>} : memref<2x128xf32, #tpu.memory_space<vmem>>, vector<2x128xf32>,
    return
  }
}

</mosaic_0001>

<bundles_post_ra>
// kernel: trident_forward.1
= control target key start
LH: loop header
LB: loop body
LE: loop exit
PB: predicated region body
PF: predicated region fallthrough
CT: control target
= control target key end

     0   :  { %vm47_vm0 = vcmask 1043456   ;;  %vm43_vm1 = vcmask 31744   ;;  %s594_s0 = inlined_call_operand.vmem [shape: f32[2,4], index: 0, kind: input, shape index: {}]   ;;  %s595_s1 = inlined_call_operand.vmem [shape: f32[4,512], index: 1, kind: input, shape index: {}]   ;;  %s596_s2 = inlined_call_operand.vmem [shape: f32[1,512], index: 2, kind: input, shape index: {}]   ;;  %s597_s3 = inlined_call_operand.vmem [shape: f32[512,128], index: 3, kind: input, shape index: {}]   ;;  %s598_s4 = inlined_call_operand.vmem [shape: f32[1,128], index: 4, kind: input, shape index: {}]   ;;  %s599_s5 = inlined_call_operand.hbm [shape: f32[2,128], index: 5, kind: output, shape index: {}]  }
   0x1   :  { %v23_v0 = vld [vmem:[%s595_s1 + $0x8] sm:$0xff]  ;;  %v22_v1 = vld [vmem:[%s595_s1] sm:$0xff]  ;;  %v163_v7 = vld [vmem:[%s597_s3 + $0x78] sm:$0xff] }
   0x2   :  { %38 = vst [vmem:[#allocation1 + $0x10] ss:$2 sm:$0xff] %v23_v0  ;;  %v21_v2 = vld [vmem:[%s594_s0] sm:$0x3]  ;;  %v195_v8 = vld [vmem:[%s597_s3 + $0x178] sm:$0xff]  ;;  %v162_v11 = vld [vmem:[%s597_s3 + $0x70] sm:$0xff] }
   0x3   :  { %36 = vst [vmem:[#allocation1] ss:$2 sm:$0xff] %v22_v1  ;;  %v211_v9 = vld [vmem:[%s597_s3 + $0x1f8] sm:$0xff]  ;;  %v194_v12 = vld [vmem:[%s597_s3 + $0x170] sm:$0xff]  ;;  %v161_v15 = vld [vmem:[%s597_s3 + $0x68] sm:$0xff] }
   0x4   :  { %v179_v10 = vld [vmem:[%s597_s3 + $0xf8] sm:$0xff]  ;;  %v210_v13 = vld [vmem:[%s597_s3 + $0x1f0] sm:$0xff]  ;;  %v193_v16 = vld [vmem:[%s597_s3 + $0x168] sm:$0xff] }
   0x5   :  { %v178_v14 = vld [vmem:[%s597_s3 + $0xf0] sm:$0xff]  ;;  %v209_v17 = vld [vmem:[%s597_s3 + $0x1e8] sm:$0xff]  ;;  %v160_v19 = vld [vmem:[%s597_s3 + $0x60] sm:$0xff] }
   0x6   :  { %v177_v18 = vld [vmem:[%s597_s3 + $0xe8] sm:$0xff]  ;;  %v192_v20 = vld [vmem:[%s597_s3 + $0x160] sm:$0xff]  ;;  %v159_v23 = vld [vmem:[%s597_s3 + $0x58] sm:$0xff] }
   0x7   :  { %v208_v21 = vld [vmem:[%s597_s3 + $0x1e0] sm:$0xff]  ;;  %v191_v24 = vld [vmem:[%s597_s3 + $0x158] sm:$0xff]  ;;  %v158_v26 = vld [vmem:[%s597_s3 + $0x50] sm:$0xff] }
   0x8   :  { %v176_v22 = vld [vmem:[%s597_s3 + $0xe0] sm:$0xff]  ;;  %v207_v25 = vld [vmem:[%s597_s3 + $0x1d8] sm:$0xff]  ;;  %v190_v28 = vld [vmem:[%s597_s3 + $0x150] sm:$0xff] }
   0x9   :  { %v41_v3 = vld.sshfl [vmem:[#allocation1 + $0x10] sm:$0xff pattern:$0x75316420]  ;;  %v42_v4 = vld.sshfl [vmem:[#allocation1 + $0x18] sm:$0xff pattern:$0x75316420] }
   0xa   :  { %317 = vmatpush.msk.msra.mxu2 %vm47_vm0, %v41_v3  ;;  %319 = vmatpush.msk.msra.mxu3 %vm47_vm0, %v42_v4  ;;  %v39_v5 = vld.sshfl [vmem:[#allocation1] sm:$0xff pattern:$0x75316420]  ;;  %v40_v6 = vld.sshfl [vmem:[#allocation1 + $0x8] sm:$0xff pattern:$0x75316420] }
   0xb   :  { %318 = vmatmul.msk.f32.vlgmr.msra.gmra.mxu2 %vm43_vm1, %v21_v2  ;;  %320 = vmatmul.msk.f32.vlgmr.msra.gmra.mxu3 %vm43_vm1, %v21_v2  ;;  %v175_v27 = vld [vmem:[%s597_s3 + $0xd8] sm:$0xff] }
   0xc   :  { %313 = vmatpush.msk.msra.mxu0 %vm47_vm0, %v39_v5  ;;  %315 = vmatpush.msk.msra.mxu1 %vm47_vm0, %v40_v6 }
   0xd   :  { %314 = vmatmul.msk.f32.vlgmr.msra.gmra.mxu0 %vm43_vm1, %v21_v2  ;;  %316 = vmatmul.msk.f32.vlgmr.msra.gmra.mxu1 %vm43_vm1, %v21_v2 }
   0xe   :  { %216 = vmatpush.msrb.mxu0 %v163_v7  ;;  %256 = vmatpush.msrb.mxu2 %v195_v8 }
   0xf   :  { %276 = vmatpush.msrb.mxu3 %v211_v9  ;;  %236 = vmatpush.msrb.mxu1 %v179_v10 }
  0x10   :  { %217 = vmatpush.msrb.mxu0 %v162_v11  ;;  %257 = vmatpush.msrb.mxu2 %v194_v12 }
  0x11   :  { %277 = vmatpush.msrb.mxu3 %v210_v13  ;;  %237 = vmatpush.msrb.mxu1 %v178_v14 }
  0x12   :  { %218 = vmatpush.msrb.mxu0 %v161_v15  ;;  %258 = vmatpush.msrb.mxu2 %v193_v16 }
  0x13   :  { %278 = vmatpush.msrb.mxu3 %v209_v17  ;;  %238 = vmatpush.msrb.mxu1 %v177_v18 }
  0x14   :  { %219 = vmatpush.msrb.mxu0 %v160_v19  ;;  %259 = vmatpush.msrb.mxu2 %v192_v20 }
  0x15   :  { %279 = vmatpush.msrb.mxu3 %v208_v21  ;;  %239 = vmatpush.msrb.mxu1 %v176_v22 }
  0x16   :  { %10 = vsyncpa [#allocation3], 0  ;;  %220 = vmatpush.msrb.mxu0 %v159_v23  ;;  %260 = vmatpush.msrb.mxu2 %v191_v24  ;;  %v206_v29 = vld [vmem:[%s597_s3 + $0x1d0] sm:$0xff]  ;;  %v157_v31 = vld [vmem:[%s597_s3 + $0x48] sm:$0xff]  ;;  %s349_s19 = smov [#allocation2]   ;;  %s304_s23 = sshll.u32 %s599_s5, 4  ;;  %s305_s23 = int_to_ptr.hbm [resolvable:$true] %s304_s23 }
  0x17   :  { %v174_v30 = vld [vmem:[%s597_s3 + $0xd0] sm:$0xff]  ;;  %280 = vmatpush.msrb.mxu3 %v207_v25  ;;  %240 = vmatpush.msrb.mxu1 %v175_v27  ;;  %v189_v32 = vld [vmem:[%s597_s3 + $0x148] sm:$0xff]  ;;  %v156_v35 = vld [vmem:[%s597_s3 + $0x40] sm:$0xff]  ;;  %s302_s20 = sshll.u32 %s349_s19, 4  ;;  %s303_s20 = int_to_ptr.vmem [resolvable:$true] %s302_s20 }
  0x18   :  { %221 = vmatpush.msrb.mxu0 %v158_v26  ;;  %261 = vmatpush.msrb.mxu2 %v190_v28  ;;  %v205_v33 = vld [vmem:[%s597_s3 + $0x1c8] sm:$0xff]  ;;  %v188_v36 = vld [vmem:[%s597_s3 + $0x140] sm:$0xff]  ;;  %v155_v39 = vld [vmem:[%s597_s3 + $0x38] sm:$0xff] }
  0x19   :  { %v173_v34 = vld [vmem:[%s597_s3 + $0xc8] sm:$0xff]  ;;  %281 = vmatpush.msrb.mxu3 %v206_v29  ;;  %241 = vmatpush.msrb.mxu1 %v174_v30  ;;  %v204_v37 = vld [vmem:[%s597_s3 + $0x1c0] sm:$0xff]  ;;  %v187_v40 = vld [vmem:[%s597_s3 + $0x138] sm:$0xff] }
  0x1a   :  { %222 = vmatpush.msrb.mxu0 %v157_v31  ;;  %262 = vmatpush.msrb.mxu2 %v189_v32  ;;  %v172_v38 = vld [vmem:[%s597_s3 + $0xc0] sm:$0xff]  ;;  %v203_v41 = vld [vmem:[%s597_s3 + $0x1b8] sm:$0xff]  ;;  %v154_v43 = vld [vmem:[%s597_s3 + $0x30] sm:$0xff] }
  0x1b   :  { %282 = vmatpush.msrb.mxu3 %v205_v33  ;;  %242 = vmatpush.msrb.mxu1 %v173_v34  ;;  %v171_v42 = vld [vmem:[%s597_s3 + $0xb8] sm:$0xff]  ;;  %v186_v44 = vld [vmem:[%s597_s3 + $0x130] sm:$0xff]  ;;  %v153_v47 = vld [vmem:[%s597_s3 + $0x28] sm:$0xff] }
  0x1c   :  { %223 = vmatpush.msrb.mxu0 %v156_v35  ;;  %263 = vmatpush.msrb.mxu2 %v188_v36  ;;  %v202_v45 = vld [vmem:[%s597_s3 + $0x1b0] sm:$0xff]  ;;  %v185_v48 = vld [vmem:[%s597_s3 + $0x128] sm:$0xff]  ;;  %v152_v51 = vld [vmem:[%s597_s3 + $0x20] sm:$0xff] }
  0x1d   :  { %283 = vmatpush.msrb.mxu3 %v204_v37  ;;  %243 = vmatpush.msrb.mxu1 %v172_v38  ;;  %v170_v46 = vld [vmem:[%s597_s3 + $0xb0] sm:$0xff]  ;;  %v201_v49 = vld [vmem:[%s597_s3 + $0x1a8] sm:$0xff]  ;;  %v184_v52 = vld [vmem:[%s597_s3 + $0x120] sm:$0xff] }
  0x1e   :  { %224 = vmatpush.msrb.mxu0 %v155_v39  ;;  %264 = vmatpush.msrb.mxu2 %v187_v40  ;;  %v169_v50 = vld [vmem:[%s597_s3 + $0xa8] sm:$0xff]  ;;  %v200_v53 = vld [vmem:[%s597_s3 + $0x1a0] sm:$0xff]  ;;  %v151_v55 = vld [vmem:[%s597_s3 + $0x18] sm:$0xff] }
  0x1f   :  { %284 = vmatpush.msrb.mxu3 %v203_v41  ;;  %244 = vmatpush.msrb.mxu1 %v171_v42  ;;  %v168_v54 = vld [vmem:[%s597_s3 + $0xa0] sm:$0xff]  ;;  %v183_v56 = vld [vmem:[%s597_s3 + $0x118] sm:$0xff]  ;;  %v150_v58 = vld [vmem:[%s597_s3 + $0x10] sm:$0xff] }
  0x20   :  { %225 = vmatpush.msrb.mxu0 %v154_v43  ;;  %265 = vmatpush.msrb.mxu2 %v186_v44  ;;  %v199_v57 = vld [vmem:[%s597_s3 + $0x198] sm:$0xff]  ;;  %v182_v60 = vld [vmem:[%s597_s3 + $0x110] sm:$0xff]  ;;  %v149_v62 = vld [vmem:[%s597_s3 + $0x8] sm:$0xff] }
  0x21   :  { %285 = vmatpush.msrb.mxu3 %v202_v45  ;;  %245 = vmatpush.msrb.mxu1 %v170_v46  ;;  %v167_v59 = vld [vmem:[%s597_s3 + $0x98] sm:$0xff]  ;;  %v198_v61 = vld [vmem:[%s597_s3 + $0x190] sm:$0xff]  ;;  %v181_v0 = vld [vmem:[%s597_s3 + $0x108] sm:$0xff] }
  0x22   :  { %226 = vmatpush.msrb.mxu0 %v153_v47  ;;  %266 = vmatpush.msrb.mxu2 %v185_v48  ;;  %v166_v63 = vld [vmem:[%s597_s3 + $0x90] sm:$0xff]  ;;  %v197_v1 = vld [vmem:[%s597_s3 + $0x188] sm:$0xff]  ;;  %v148_v2 = vld [vmem:[%s597_s3] sm:$0xff] }
  0x23   :  { %286 = vmatpush.msrb.mxu3 %v201_v49  ;;  %246 = vmatpush.msrb.mxu1 %v169_v50  ;;  %v165_v3 = vld [vmem:[%s597_s3 + $0x88] sm:$0xff]  ;;  %v180_v4 = vld [vmem:[%s597_s3 + $0x100] sm:$0xff] }
  0x24   :  { %227 = vmatpush.msrb.mxu0 %v152_v51  ;;  %267 = vmatpush.msrb.mxu2 %v184_v52  ;;  %v196_v5 = vld [vmem:[%s597_s3 + $0x180] sm:$0xff] }
  0x25   :  { %287 = vmatpush.msrb.mxu3 %v200_v53  ;;  %247 = vmatpush.msrb.mxu1 %v168_v54  ;;  %v164_v6 = vld [vmem:[%s597_s3 + $0x80] sm:$0xff] }
  0x26   :  { %228 = vmatpush.msrb.mxu0 %v151_v55  ;;  %268 = vmatpush.msrb.mxu2 %v183_v56  ;;  %v24_v7 = vld [vmem:[%s596_s2] sm:$0xf] }
  0x27   :  { %288 = vmatpush.msrb.mxu3 %v199_v57  ;;  %248 = vmatpush.msrb.mxu1 %v167_v59  ;;  %v26_v8 = vperm.slane %v24_v7, 0  ;;  %v27_v9 = vperm.slane %v24_v7, 1  ;;  %v28_v13 = vperm.slane %v24_v7, 2  ;;  %v29_v14 = vperm.slane %v24_v7, 3  ;;  %v322_v28 = vld [vmem:[%s598_s4] ss:$0 sm:$0xff] }
  0x28   :  { %229 = vmatpush.msrb.mxu0 %v150_v58  ;;  %269 = vmatpush.msrb.mxu2 %v182_v60 }
  0x29   :  { %289 = vmatpush.msrb.mxu3 %v198_v61  ;;  %249 = vmatpush.msrb.mxu1 %v166_v63 }
  0x2a   :  { %230 = vmatpush.msrb.mxu0 %v149_v62  ;;  %270 = vmatpush.msrb.mxu2 %v181_v0 }
  0x2b   :  { %290 = vmatpush.msrb.mxu3 %v197_v1  ;;  %250 = vmatpush.msrb.mxu1 %v165_v3 }
  0x2c   :  { %231 = vmatpush.msrb.mxu0 %v148_v2  ;;  %271 = vmatpush.msrb.mxu2 %v180_v4 }
  0x2d   :  { %291 = vmatpush.msrb.mxu3 %v196_v5  ;;  %251 = vmatpush.msrb.mxu1 %v164_v6 }
  0x8a   :  { %v73_v10 = vpop.f32.mrf.mxu0  ;;  %v93_v11 = vpop.f32.mrf.mxu1 }
  0x8b   :  { %v74_v12 = vadd.f32 %v73_v10, %v26_v8  ;;  %v94_v15 = vadd.f32 %v93_v11, %v27_v9 }
  0x8d   :  { %v140_v16 = vmul.f32 0.01, %v74_v12  ;;  %v141_v17 = vmul.f32 0.01, %v94_v15  ;;  %vm136_vm2 = vcmp.gt.f32.partialorder %v74_v12, 0.0  ;;  %vm137_vm3 = vcmp.gt.f32.partialorder %v94_v15, 0.0 }
  0x8e   :  { %v113_v18 = vpop.f32.mrf.mxu2  ;;  %v133_v19 = vpop.f32.mrf.mxu3 }
  0x8f   :  { %v114_v20 = vadd.f32 %v113_v18, %v28_v13  ;;  %v134_v21 = vadd.f32 %v133_v19, %v29_v14  ;;  %v144_v22 = vsel %vm136_vm2, %v74_v12, %v140_v16  ;;  %v145_v23 = vsel %vm137_vm3, %v94_v15, %v141_v17 }
  0x90   :  { %232 = vmatmul.f32.vlgmr.msrb.gmra.mxu0 %v144_v22  ;;  %252 = vmatmul.f32.vlgmr.msrb.gmra.mxu1 %v145_v23 }
  0x91   :  { %v142_v24 = vmul.f32 0.01, %v114_v20  ;;  %v143_v25 = vmul.f32 0.01, %v134_v21  ;;  %vm138_vm4 = vcmp.gt.f32.partialorder %v114_v20, 0.0  ;;  %vm139_vm5 = vcmp.gt.f32.partialorder %v134_v21, 0.0 }
  0x93   :  { %v146_v26 = vsel %vm138_vm4, %v114_v20, %v142_v24  ;;  %v147_v27 = vsel %vm139_vm5, %v134_v21, %v143_v25 }
  0x94   :  { %272 = vmatmul.f32.vlgmr.msrb.gmra.mxu2 %v146_v26  ;;  %292 = vmatmul.f32.vlgmr.msrb.gmra.mxu3 %v147_v27 }
 0x10d   :  { %v233_v29 = vpop.f32.mrf.mxu0  ;;  %v253_v31 = vpop.f32.mrf.mxu1 }
 0x10e   :  { %v234_v30 = vadd.f32 %v322_v28, %v233_v29 }
 0x110   :  { %v254_v32 = vadd.f32 %v253_v31, %v234_v30 }
 0x117   :  { %v273_v33 = vpop.f32.mrf.mxu2  ;;  %v293_v35 = vpop.f32.mrf.mxu3 }
 0x118   :  { %v274_v34 = vadd.f32 %v273_v33, %v254_v32 }
 0x11a   :  { %v294_v36 = vadd.f32 %v293_v35, %v274_v34 }
 0x11c   :  { %296 = vst [vmem:[#allocation2] sm:$0x3] %v294_v36 }
 0x11d   :  { %307 = dma.vmem_to_hbm [thread:$0]  %s303_s20, 32, %s305_s23, [#allocation3]  }
 0x11e   :  { %347 = dma.done.wait [#allocation3], 32  }
 0x11f   :  { %348 = vsyncadd [#allocation3], 4294967264 }
 0x120   :  { %312 = vsyncpa [#allocation3], 1 }

</bundles_post_ra>
